<compile_context>
chip_gen: v7x
topology: tpu7x:2x2x1
jax: 0.10.0
libtpu: 0.0.40
codegen_flags: <defaults>
</compile_context>

<pallas_src>
import jax
import jax.numpy as jnp
from jax import lax
from jax.experimental import pallas as pl
from jax.experimental.pallas import tpu as pltpu


BN_EPS = 1e-5
LANE = 128
VMEM_LIMIT = 48 * 1024 * 1024  # fits v7x (64 MiB physical) and v5e/v6e


def _round_up(a, b):
    return (a + b - 1) // b * b


# ----------------- Pass 1: conv (matmul) + per-tile BN partial sums -----------------
def _conv_stats_kernel(p_ref, w_ref, y_ref, s1_ref, s2_ref):
    # (TM, CK) @ (CK, C_out_pad) on the MXU with f32 accumulation.
    y = jnp.dot(p_ref[...], w_ref[...], preferred_element_type=jnp.float32)
    y_ref[...] = y
    # Per-channel partial sums (column reductions -> XLU slot, free next to the MXU).
    s1_ref[...] = jnp.sum(y, axis=0, keepdims=True)[None]      # (1, 1, C_out_pad)
    s2_ref[...] = jnp.sum(y * y, axis=0, keepdims=True)[None]  # (1, 1, C_out_pad)


# ----------------- Pass 2: fused normalize (scale/shift) + ReLU -----------------
def _bn_relu_kernel(y_ref, scale_ref, shift_ref, o_ref):
    o_ref[...] = jnp.maximum(
        y_ref[...] * scale_ref[...] + shift_ref[...], 0.0
    ).astype(o_ref.dtype)


def _im2col(x, kernel, stride, padding):
    """x: (N, C, L) -> patches (N*L_out, C*K) channels-last, plus L_out."""
    n, c, l = x.shape
    xp = jnp.pad(x, ((0, 0), (0, 0), (padding, padding)))
    lp = l + 2 * padding
    l_out = (lp - kernel) // stride + 1
    cols = [xp[:, :, k:k + (l_out - 1) * stride + 1:stride] for k in range(kernel)]
    patches = jnp.stack(cols, axis=-1)               # (N, C, L_out, K)
    patches = jnp.transpose(patches, (0, 2, 1, 3))   # (N, L_out, C, K)
    return patches.reshape(n * l_out, c * kernel), l_out


def conv1d_block(x, weight, bias, gamma, beta, *, stride=1, padding=0,
                 compute_dtype=jnp.bfloat16, tile_m=512):
    """Forward pass of Conv1dBlock.

    x:      (N, C_in, L)      float32
    weight: (C_out, C_in, K)  float32
    bias:   (C_out,)          float32  (cancels exactly under training-mode BN)
    gamma:  (C_out,)          float32  (BatchNorm weight)
    beta:   (C_out,)          float32  (BatchNorm bias)
    returns (N, C_out, L_out) x.dtype
    """
    del bias  # Conv bias is removed by the BatchNorm mean subtraction (exact).

    n, c_in, _ = x.shape
    c_out, _, k = weight.shape

    patches, l_out = _im2col(x, k, stride, padding)   # (M, C_in*K); note K-fold HBM blowup
    m = n * l_out
    ck = c_in * k

    tm = min(tile_m, _round_up(m, 8))
    m_pad = _round_up(m, tm)
    num_tiles = m_pad // tm
    c_out_pad = _round_up(c_out, LANE)                # lane-dense output channels

    # Zero-pad rows / output channels; cast matmul operands to the compute dtype.
    patches_p = jnp.zeros((m_pad, ck), compute_dtype).at[:m, :].set(
        patches.astype(compute_dtype))
    w2d = jnp.zeros((ck, c_out_pad), compute_dtype).at[:, :c_out].set(
        weight.reshape(c_out, ck).T.astype(compute_dtype))

    itemsize = jnp.dtype(compute_dtype).itemsize
    flops1 = 2 * m_pad * ck * c_out_pad
    bytes1 = (m_pad * ck * itemsize + ck * c_out_pad * itemsize
              + m_pad * c_out_pad * 4 + 2 * num_tiles * c_out_pad * 4)

    y, ps1, ps2 = pl.pallas_call(
        _conv_stats_kernel,
        out_shape=(
            jax.ShapeDtypeStruct((m_pad, c_out_pad), jnp.float32),
            jax.ShapeDtypeStruct((num_tiles, 1, c_out_pad), jnp.float32),
            jax.ShapeDtypeStruct((num_tiles, 1, c_out_pad), jnp.float32),
        ),
        grid=(num_tiles,),
        in_specs=[
            pl.BlockSpec((tm, ck), lambda i: (i, 0)),
            pl.BlockSpec((ck, c_out_pad), lambda i: (0, 0)),
        ],
        out_specs=(
            pl.BlockSpec((tm, c_out_pad), lambda i: (i, 0)),
            pl.BlockSpec((1, 1, c_out_pad), lambda i: (i, 0, 0)),
            pl.BlockSpec((1, 1, c_out_pad), lambda i: (i, 0, 0)),
        ),
        compiler_params=pltpu.CompilerParams(
            dimension_semantics=("parallel",),
            vmem_limit_bytes=VMEM_LIMIT),
        cost_estimate=pl.CostEstimate(
            flops=flops1, transcendentals=0, bytes_accessed=bytes1),
    )(patches_p, w2d)

    # Training-mode BatchNorm1d batch statistics (biased variance), all in f32.
    # Zero-padded rows contribute exactly zero (no bias added in-kernel).
    s1 = jnp.sum(ps1, axis=(0, 1))                    # (C_out_pad,)
    s2 = jnp.sum(ps2, axis=(0, 1))
    mean = s1 / m
    var = jnp.maximum(s2 / m - mean * mean, 0.0)
    gamma_p = jnp.zeros((c_out_pad,), jnp.float32).at[:c_out].set(gamma.astype(jnp.float32))
    beta_p = jnp.zeros((c_out_pad,), jnp.float32).at[:c_out].set(beta.astype(jnp.float32))
    scale1d = gamma_p * lax.rsqrt(var + BN_EPS)       # rsqrt once, hoisted out of the tile loop
    shift1d = beta_p - mean * scale1d
    scale = scale1d.reshape(1, c_out_pad)
    shift = shift1d.reshape(1, c_out_pad)

    flops2 = 2 * m_pad * c_out_pad
    bytes2 = m_pad * c_out_pad * 4 + m_pad * c_out_pad * jnp.dtype(x.dtype).itemsize \
        + 2 * c_out_pad * 4

    out2d = pl.pallas_call(
        _bn_relu_kernel,
        out_shape=jax.ShapeDtypeStruct((m_pad, c_out_pad), x.dtype),
        grid=(num_tiles,),
        in_specs=[
            pl.BlockSpec((tm, c_out_pad), lambda i: (i, 0)),
            pl.BlockSpec((1, c_out_pad), lambda i: (0, 0)),
            pl.BlockSpec((1, c_out_pad), lambda i: (0, 0)),
        ],
        out_specs=pl.BlockSpec((tm, c_out_pad), lambda i: (i, 0)),
        compiler_params=pltpu.CompilerParams(
            dimension_semantics=("parallel",),
            vmem_limit_bytes=VMEM_LIMIT),
        cost_estimate=pl.CostEstimate(
            flops=flops2, transcendentals=0, bytes_accessed=bytes2),
    )(y, scale, shift)

    # Slice off padding, (M, C_out) -> (N, L_out, C_out) -> NCL. Lightweight XLA epilogue.
    out2d = out2d[:m, :c_out]
    return jnp.transpose(out2d.reshape(n, l_out, c_out), (0, 2, 1))


def _reference(x, weight, bias, gamma, beta, *, stride=1, padding=0):
    """Pure-JAX reference (conv + bias + training-mode BN + ReLU)."""
    y = lax.conv_general_dilated(
        x, weight, window_strides=(stride,), padding=[(padding, padding)],
        dimension_numbers=("NCH", "OIH", "NCH"))
    y = y + bias[None, :, None]
    mean = jnp.mean(y, axis=(0, 2), keepdims=True)
    var = jnp.mean((y - mean) ** 2, axis=(0, 2), keepdims=True)
    y = (y - mean) * lax.rsqrt(var + BN_EPS)
    y = y * gamma[None, :, None] + beta[None, :, None]
    return jnp.maximum(y, 0.0)


if __name__ == "__main__":
    # Small shapes consistent with Conv1d: batch=2, in_channels=4, L=16,
    # out_channels=8, kernel=3, stride=1, padding=1.
    N, C_IN, L = 2, 4, 16
    C_OUT, K, STRIDE, PAD = 8, 3, 1, 1

    key = jax.random.PRNGKey(0)
    kx, kw, kb = jax.random.split(key, 3)

    x = jax.random.normal(kx, (N, C_IN, L), dtype=jnp.float32)
    fan_in = C_IN * K
    bound = 1.0 / jnp.sqrt(jnp.float32(fan_in))
    weight = jax.random.uniform(kw, (C_OUT, C_IN, K), jnp.float32, -bound, bound)
    bias = jax.random.uniform(kb, (C_OUT,), jnp.float32, -bound, bound)
    gamma = jnp.ones((C_OUT,), jnp.float32)   # BatchNorm1d default weight
    beta = jnp.zeros((C_OUT,), jnp.float32)   # BatchNorm1d default bias

    ref = _reference(x, weight, bias, gamma, beta, stride=STRIDE, padding=PAD)

    # f32 compute path: tight tolerance.
    out_f32 = conv1d_block(x, weight, bias, gamma, beta, stride=STRIDE, padding=PAD,
                           compute_dtype=jnp.float32)
    out_f32 = jax.block_until_ready(out_f32)
    assert out_f32.shape == (N, C_OUT, L), out_f32.shape
    assert jnp.allclose(out_f32, ref, atol=1e-4, rtol=1e-4), \
        float(jnp.max(jnp.abs(out_f32 - ref)))

    # bf16 matmul inputs with f32 accumulation (default fast path): looser tolerance.
    out_bf16 = conv1d_block(x, weight, bias, gamma, beta, stride=STRIDE, padding=PAD,
                            compute_dtype=jnp.bfloat16)
    out_bf16 = jax.block_until_ready(out_bf16)
    assert out_bf16.shape == (N, C_OUT, L), out_bf16.shape
    assert jnp.allclose(out_bf16, ref, atol=5e-2, rtol=5e-2), \
        float(jnp.max(jnp.abs(out_bf16 - ref)))

    print("KERNEL_OK")
</pallas_src>

<mosaic_0001>
module attributes {stable_mosaic.version = 11 : i64} {
  func.func @_conv_stats_kernel(%arg0: i32, %arg1: memref<32x12xf32, #tpu.memory_space<vmem>>, %arg2: memref<12x128xf32, #tpu.memory_space<vmem>>, %arg3: memref<32x128xf32, #tpu.memory_space<vmem>>, %arg4: memref<1x1x128xf32, #tpu.memory_space<vmem>>, %arg5: memref<1x1x128xf32, #tpu.memory_space<vmem>>) attributes {dimension_semantics = [#tpu.dimension_semantics<parallel>], iteration_bounds = array<i64: 1>, scalar_prefetch = 0 : i64, scratch_operands = 0 : i64, tpu.core_type = #tpu.core_type<tc>, window_params = [{transform_indices = @transform_0, window_bounds = array<i64: 32, 12>}, {pipeline_mode = #tpu.pipeline_mode<synchronous>, transform_indices = @transform_1, window_bounds = array<i64: 12, 128>}, {transform_indices = @transform_2, window_bounds = array<i64: 32, 128>}, {transform_indices = @transform_3, window_bounds = array<i64: 1, 1, 128>}, {transform_indices = @transform_4, window_bounds = array<i64: 1, 1, 128>}]} {
    %c0 = arith.constant 0 : index
    %c0_0 = arith.constant 0 : index
    %0 = vector.load %arg1[%c0, %c0_0] : memref<32x12xf32, #tpu.memory_space<vmem>>, vector<32x12xf32>
    %c0_1 = arith.constant 0 : index
    %c0_2 = arith.constant 0 : index
    %1 = vector.load %arg2[%c0_1, %c0_2] : memref<12x128xf32, #tpu.memory_space<vmem>>, vector<12x128xf32>
    %cst = arith.constant dense<0.000000e+00> : vector<32x128xf32>
    %2 = tpu.matmul %0, %1, %cst {dimension_numbers = #tpu.dot_dimension_numbers<[1], [0], [0], [1], [0, 0, 1, 1], [], []>} : vector<32x12xf32>, vector<12x128xf32>, vector<32x128xf32> -> vector<32x128xf32>
    %c0_3 = arith.constant 0 : index
    %c0_4 = arith.constant 0 : index
    %3 = vector.load %arg3[%c0_3, %c0_4] : memref<32x128xf32, #tpu.memory_space<vmem>>, vector<32x128xf32>
    tpu.vector_store %arg3[%c0_3, %c0_4], %2 {strides = array<i32>} : memref<32x128xf32, #tpu.memory_space<vmem>>, vector<32x128xf32>,
    %cst_5 = arith.constant dense<0.000000e+00> : vector<128xf32>
    %4 = vector.multi_reduction <add>, %2, %cst_5 [0] : vector<32x128xf32> to vector<128xf32>
    %5 = vector.shape_cast %4 : vector<128xf32> to vector<1x128xf32>
    %6 = vector.shape_cast %5 : vector<1x128xf32> to vector<1x1x128xf32>
    %c0_6 = arith.constant 0 : index
    %c0_7 = arith.constant 0 : index
    %c0_8 = arith.constant 0 : index
    %7 = vector.load %arg4[%c0_6, %c0_7, %c0_8] : memref<1x1x128xf32, #tpu.memory_space<vmem>>, vector<1x1x128xf32>
    tpu.vector_store %arg4[%c0_6, %c0_7, %c0_8], %6 {strides = array<i32>} : memref<1x1x128xf32, #tpu.memory_space<vmem>>, vector<1x1x128xf32>,
    %8 = arith.mulf %2, %2 : vector<32x128xf32>
    %cst_9 = arith.constant dense<0.000000e+00> : vector<128xf32>
    %9 = vector.multi_reduction <add>, %8, %cst_9 [0] : vector<32x128xf32> to vector<128xf32>
    %10 = vector.shape_cast %9 : vector<128xf32> to vector<1x128xf32>
    %11 = vector.shape_cast %10 : vector<1x128xf32> to vector<1x1x128xf32>
    %c0_10 = arith.constant 0 : index
    %c0_11 = arith.constant 0 : index
    %c0_12 = arith.constant 0 : index
    %12 = vector.load %arg5[%c0_10, %c0_11, %c0_12] : memref<1x1x128xf32, #tpu.memory_space<vmem>>, vector<1x1x128xf32>
    tpu.vector_store %arg5[%c0_10, %c0_11, %c0_12], %11 {strides = array<i32>} : memref<1x1x128xf32, #tpu.memory_space<vmem>>, vector<1x1x128xf32>,
    return
  }
  func.func @transform_0(%arg0: i32) -> (i32, i32) {
    %c0_i32 = arith.constant 0 : i32
    %c0_i32_0 = arith.constant 0 : i32
    return %arg0, %c0_i32 : i32, i32
  }
  func.func @transform_1(%arg0: i32) -> (i32, i32) {
    %c0_i32 = arith.constant 0 : i32
    %c0_i32_0 = arith.constant 0 : i32
    %c0_i32_1 = arith.constant 0 : i32
    return %c0_i32, %c0_i32_0 : i32, i32
  }
  func.func @transform_2(%arg0: i32) -> (i32, i32) {
    %c0_i32 = arith.constant 0 : i32
    %c0_i32_0 = arith.constant 0 : i32
    return %arg0, %c0_i32 : i32, i32
  }
  func.func @transform_3(%arg0: i32) -> (i32, i32, i32) {
    %c0_i32 = arith.constant 0 : i32
    %c0_i32_0 = arith.constant 0 : i32
    %c0_i32_1 = arith.constant 0 : i32
    return %arg0, %c0_i32, %c0_i32_0 : i32, i32, i32
  }
  func.func @transform_4(%arg0: i32) -> (i32, i32, i32) {
    %c0_i32 = arith.constant 0 : i32
    %c0_i32_0 = arith.constant 0 : i32
    %c0_i32_1 = arith.constant 0 : i32
    return %arg0, %c0_i32, %c0_i32_0 : i32, i32, i32
  }
}

</mosaic_0001>

<bundles_post_ra>
// kernel: tpu_custom_call.1
= control target key start
LH: loop header
LB: loop body
LE: loop exit
PB: predicated region body
PF: predicated region fallthrough
CT: control target
= control target key end

     0   :  { %10 = vsyncpa [#allocation3], 0  ;;  %vm35_vm0 = vcmask 1043456   ;;  %vm300_vm1 = vmmov 1   ;;  %vm22_vm3 = vcmask 97280   ;;  %s400_s0 = inlined_call_operand.vmem [shape: f32[32,12], index: 0, kind: input, shape index: {}]   ;;  %s401_s1 = inlined_call_operand.vmem [shape: f32[12,128], index: 1, kind: input, shape index: {}]   ;;  %s402_s2 = inlined_call_operand.hbm [shape: f32[32,128], index: 2, kind: output, shape index: {0}]   ;;  %s403_s3 = inlined_call_operand.hbm [shape: f32[1,1,128], index: 3, kind: output, shape index: {1}]   ;;  %s404_s4 = inlined_call_operand.hbm [shape: f32[1,1,128], index: 4, kind: output, shape index: {2}]  }
   0x1   :  { %v20_v0 = vld [vmem:[%s401_s1] sm:$0xff]  ;;  %v21_v1 = vld [vmem:[%s401_s1 + $0x8] sm:$0xf]  ;;  %vm217_vm2 = vmpackc.low %vm35_vm0, %vm300_vm1 }
   0x2   :  { %v16_v2 = vld [vmem:[%s400_s0] sm:$0xff]  ;;  %v216_v3 = vpack.c.bf16 %v21_v1, %v20_v0  ;;  %v18_v4 = vld [vmem:[%s400_s0 + $0x10] sm:$0xff] }
   0x3   :  { %210 = vmatprep.mubr.msk.f32.mxu0 %vm22_vm3, %v16_v2  ;;  %213 = vmatprep.mubr.msk.f32.mxu1 %vm22_vm3, %v18_v4 }
   0x4   :  { %11 = vsyncpa [#allocation5], 0  ;;  %218 = vmatprep.subr.msk.bf16.mxu0 %vm217_vm2, %v216_v3  ;;  %222 = vmatprep.subr.msk.bf16.mxu1 %vm217_vm2, %v216_v3  ;;  %v17_v5 = vld [vmem:[%s400_s0 + $0x8] sm:$0xff]  ;;  %v19_v6 = vld [vmem:[%s400_s0 + $0x18] sm:$0xff]  ;;  %s301_s26 = smov [#allocation2]  }
   0x5   :  { %221 = vmatpush3.bf16.msk.msra.mxu0 %vm217_vm2, %v216_v3  ;;  %223 = vmatpush3.bf16.msk.msra.mxu1 %vm217_vm2, %v216_v3  ;;  %s157_s27 = sshll.u32 %s301_s26, 4  ;;  %s349_s27 = int_to_ptr.vmem [resolvable:$true] %s157_s27 }
   0x6   :  { %s230_s0 = scalar_lea.vmem %s349_s27, 512  ;;  %p235_p1 = scmp.lt.s32.totalorder %s349_s27, %s349_s27 }
   0x7   :  { %p231_p0 = scmp.ne.s32.totalorder %s349_s27, %s230_s0  ;;  %p236_p2 = scmp.lt.s32.totalorder %s230_s0, %s230_s0 }
   0x8   :  { %211 = vmatmul.mubr.msk.f32.vlgmr.msra.gmra.mrb[0].mxu0 %vm22_vm3, %v17_v5  ;;  %214 = vmatmul.mubr.msk.f32.vlgmr.msra.gmra.mrb[0].mxu1 %vm22_vm3, %v19_v6 }
   0x9   :  { %p237_p3 = por %p236_p2, %p235_p1 }
   0xb   :  { %p238_p4 = pnand %p237_p3, %p231_p0 }
  0xdb   :  { %v212_v7 = vpop.f32.mrb[0].mxu0  ;;  %v215_v8 = vpop.f32.mrb[0].mxu1 }
  0xdc   :  { %125 = vst [vmem:[#allocation2 + $0x8] sm:$0xff] %v212_v7  ;;  %v139_v9 = vmul.f32 %v212_v7, %v212_v7  ;;  %v105_v10 = vpop.f32.mrb[1].mxu0  ;;  %127 = vst [vmem:[#allocation2 + $0x18] sm:$0xff] %v215_v8  ;;  %v115_v11 = vpop.f32.mrb[1].mxu1 }
  0xdd   :  { %124 = vst [vmem:[#allocation2] sm:$0xff] %v105_v10  ;;  %v128_v12 = vadd.f32 %v212_v7, %v105_v10  ;;  %v138_v13 = vmul.f32 %v105_v10, %v105_v10  ;;  %126 = vst [vmem:[#allocation2 + $0x10] sm:$0xff] %v115_v11  ;;  %v140_v14 = vmul.f32 %v115_v11, %v115_v11 }
  0xde   :  { %241 = shalt.err (!%p238_p4)
}
  0xdf   :  { %s242_s30 = scalar_lea.hbm %s402_s2, 512 }
  0xe0   :  { %p243_p5 = scmp.ne.s32.totalorder %s402_s2, %s242_s30  ;;  %p246_p6 = scmp.lt.u32.totalorder %s242_s30, %s402_s2 }
  0xe2   :  { %p248_p7 = pnand %p246_p6, %p243_p5 }
  0xe4   :  { %251 = shalt.err (!%p248_p7)
}
  0xe5   :  { %s302_s9 = smov 128   ;;  %s303_s10 = smov 8   ;;  %v142_v15 = vadd.f32 %v139_v9, %v138_v13  ;;  %v129_v16 = vadd.f32 %v128_v12, %v115_v11  ;;  %v141_v17 = vmul.f32 %v215_v8, %v215_v8 }
  0xe6   :  { %163 = dma.vmem_to_hbm [thread:$0]  %s349_s27, 512, %s402_s2, [#allocation3], %s302_s9, %s302_s9, %s303_s10  }
  0xe7   :  { %v130_v18 = vadd.f32 %v215_v8, %v129_v16  ;;  %v143_v19 = vadd.f32 %v142_v15, %v140_v14  ;;  %s304_s13 = smov [#allocation4]   ;;  %s305_s15 = smov [#allocation6]  }
  0xe8   :  { %s170_s14 = sshll.u32 %s304_s13, 4  ;;  %s180_s16 = sshll.u32 %s305_s15, 4  ;;  %s171_s14 = int_to_ptr.vmem [resolvable:$true] %s170_s14  ;;  %s368_s16 = int_to_ptr.vmem [resolvable:$true] %s180_s16 }
  0xe9   :  { %v131_v20 = vrot.slane %v130_v18, 4  ;;  %v144_v21 = vadd.f32 %v143_v19, %v141_v17  ;;  %s252_s2 = scalar_lea.vmem %s171_s14, 16  ;;  %s256_s17 = scalar_lea.vmem %s171_s14, 32 }
  0xea   :  { %p253_p8 = scmp.ne.s32.totalorder %s171_s14, %s252_s2  ;;  %p257_p9 = scmp.lt.s32.totalorder %s171_s14, %s171_s14 }
  0xeb   :  { %v132_v22 = vadd.f32 %v131_v20, %v130_v18  ;;  %v145_v23 = vrot.slane %v144_v21, 4  ;;  %p258_p10 = scmp.lt.s32.totalorder %s256_s17, %s252_s2 }
  0xed   :  { %v133_v24 = vrot.slane %v132_v22, 2  ;;  %v146_v25 = vadd.f32 %v145_v23, %v144_v21  ;;  %p259_p11 = por %p258_p10, %p257_p9 }
  0xef   :  { %v134_v26 = vadd.f32 %v133_v24, %v132_v22  ;;  %v147_v27 = vrot.slane %v146_v25, 2  ;;  %p260_p12 = pnand %p259_p11, %p253_p8 }
  0xf1   :  { %v135_v28 = vrot.slane %v134_v26, 1  ;;  %v148_v29 = vadd.f32 %v147_v27, %v146_v25 }
  0xf3   :  { %v136_v30 = vadd.f32 %v135_v28, %v134_v26  ;;  %v149_v31 = vrot.slane %v148_v29, 1 }
  0xf5   :  { %137 = vst [vmem:[#allocation4] sm:$0x1] %v136_v30  ;;  %v150_v32 = vadd.f32 %v149_v31, %v148_v29 }
  0xf6   :  { %263 = shalt.err (!%p260_p12)
}
  0xf7   :  { %s264_s20 = scalar_lea.hbm %s403_s3, 16 }
  0xf8   :  { %p265_p13 = scmp.ne.s32.totalorder %s403_s3, %s264_s20  ;;  %p268_p0 = scmp.lt.u32.totalorder %s264_s20, %s403_s3 }
  0xfa   :  { %p270_p1 = pnand %p268_p0, %p265_p13 }
  0xfc   :  { %273 = shalt.err (!%p270_p1)
}
  0xfd   :  { %173 = dma.vmem_to_hbm [thread:$0]  %s171_s14, 16, %s403_s3, [#allocation5]   ;;  %151 = vst [vmem:[#allocation6] sm:$0x1] %v150_v32 }
  0xfe   :  { %s274_s26 = scalar_lea.vmem %s368_s16, 16  ;;  %s278_s27 = scalar_lea.vmem %s368_s16, 32 }
  0xff   :  { %p275_p2 = scmp.ne.s32.totalorder %s368_s16, %s274_s26  ;;  %p279_p3 = scmp.lt.s32.totalorder %s368_s16, %s368_s16 }
 0x100   :  { %p280_p4 = scmp.lt.s32.totalorder %s278_s27, %s274_s26 }
 0x102   :  { %p281_p5 = por %p280_p4, %p279_p3 }
 0x104   :  { %p282_p6 = pnand %p281_p5, %p275_p2 }
 0x106   :  { %285 = shalt.err (!%p282_p6)
}
 0x107   :  { %s286_s29 = scalar_lea.hbm %s404_s4, 16 }
 0x108   :  { %p287_p7 = scmp.ne.s32.totalorder %s404_s4, %s286_s29  ;;  %p290_p8 = scmp.lt.u32.totalorder %s286_s29, %s404_s4 }
 0x10a   :  { %p292_p9 = pnand %p290_p8, %p287_p7 }
 0x10c   :  { %295 = shalt.err (!%p292_p9)
}
 0x10d   :  { %183 = dma.vmem_to_hbm [thread:$0]  %s368_s16, 16, %s404_s4, [#allocation5]  }
 0x10e   :  { %296 = dma.done.wait [#allocation3], 512  }
 0x10f   :  { %297 = vsyncadd [#allocation3], 4294966784 }
 0x110   :  { %298 = dma.done.wait [#allocation5], 32  }
 0x111   :  { %299 = vsyncadd [#allocation5], 4294967264 }
 0x112   :  { %193 = vsyncpa [#allocation3], 1 }
 0x113   :  { %194 = vsyncpa [#allocation5], 1 }

</bundles_post_ra>
